<compile_context>
chip_gen: v7x
topology: tpu7x:2x2x1
jax: 0.10.0
libtpu: 0.0.40
codegen_flags: <defaults>
</compile_context>

<pallas_src>
import functools

import jax
import jax.numpy as jnp
from jax.experimental import pallas as pl
from jax.experimental.pallas import tpu as pltpu

EMB_DIM = 50
SEQ_LEN = 5            # 250 = 5 * 50
HIDDEN = 100
NUM_TAGS = 36

LANE = 128
HIDDEN_PAD = 128       # 100 -> 128 (lane-dense MXU operand)
OUT_PAD = 128          # 36  -> 128 (lane-dense MXU operand; store slices to 36)


def _round_up(x, m):
    return (x + m - 1) // m * m


def pos_kernel(ids_ref, m_ref, b1_ref, w2_ref, b2_ref, out_ref):
    """One grid step == one (TB,) slab of the batch.

    ids_ref : (TB, SEQ_LEN)               int32
    m_ref   : (SEQ_LEN*V_PAD, HIDDEN_PAD) bf16   fused  emb @ fc1-weight
    b1_ref  : (1, HIDDEN_PAD)             f32
    w2_ref  : (HIDDEN_PAD, OUT_PAD)       bf16
    b2_ref  : (1, OUT_PAD)                f32
    out_ref : (TB, NUM_TAGS)              f32
    """
    ids = ids_ref[...]
    tb = ids.shape[0]
    v_pad = m_ref.shape[0] // SEQ_LEN

    # Single hoisted (TB, V_PAD) lane-iota, reused for every token position
    # (JAX does not CSE broadcast_in_dim; don't re-materialize it 5 times).
    lane = jax.lax.broadcasted_iota(jnp.int32, (tb, v_pad), 1)

    # Chunked per-position one-hot: one compare per element over V_PAD lanes per
    # position; the 128-aligned chunks concatenate into the fused (pos, vocab)
    # axis. Out-of-range / padding / negative ids select a zero row of M (same
    # behavior as padding_idx=0, and no cross-position aliasing).
    chunks = [(lane == ids[:, s:s + 1]).astype(jnp.bfloat16) for s in range(SEQ_LEN)]
    onehot = jnp.concatenate(chunks, axis=1)              # (TB, SEQ_LEN*V_PAD) bf16

    # Fused embedding-gather + fc1: one MXU matmul; bias add + tanh in f32.
    h = jnp.dot(onehot, m_ref[...], preferred_element_type=jnp.float32)
    h = jnp.tanh(h + b1_ref[...])                          # (TB, HIDDEN_PAD) f32

    # dropout(p=0.3) is identity at inference time.
    # TODO(synk): training-mode dropout (pltpu.prng_seed / prng_random_bits) not emitted.

    logits = jnp.dot(h.astype(jnp.bfloat16), w2_ref[...],
                     preferred_element_type=jnp.float32) + b2_ref[...]
    out_ref[...] = logits[:, :NUM_TAGS]                    # masked store of 36 lanes


def build_fused_params(emb, w1, b1, w2, b2):
    """Model-load-time step: fold the (linear) embedding gather into fc1 and pad
    all lane dims to 128. Call ONCE and reuse the result for every forward.

    Returns (m, b1p, w2p, b2p) with
        m[s * v_pad + v, :HIDDEN] = emb[v] @ w1[s*EMB_DIM:(s+1)*EMB_DIM, :]   (bf16)
    """
    V, D = emb.shape
    assert D == EMB_DIM
    v_pad = _round_up(V, LANE)

    w1_3d = w1.reshape(SEQ_LEN, EMB_DIM, HIDDEN)                  # (S, D, H)
    m = jnp.einsum("vd,sdh->svh", emb, w1_3d)                     # (S, V, H) f32
    m = jnp.pad(m, ((0, 0), (0, v_pad - V), (0, HIDDEN_PAD - HIDDEN)))
    m = m.reshape(SEQ_LEN * v_pad, HIDDEN_PAD).astype(jnp.bfloat16)

    b1p = jnp.pad(b1.reshape(1, HIDDEN),
                  ((0, 0), (0, HIDDEN_PAD - HIDDEN))).astype(jnp.float32)
    w2p = jnp.pad(w2, ((0, HIDDEN_PAD - HIDDEN),
                       (0, OUT_PAD - NUM_TAGS))).astype(jnp.bfloat16)
    b2p = jnp.pad(b2.reshape(1, NUM_TAGS),
                  ((0, 0), (0, OUT_PAD - NUM_TAGS))).astype(jnp.float32)
    return m, b1p, w2p, b2p


@functools.partial(jax.jit, static_argnames=("block_b",))
def pos_forward(ids, m, b1p, w2p, b2p, *, block_b=512):
    """Per-call forward. Weights must already be fused/padded (build_fused_params)."""
    B, S = ids.shape
    assert S == SEQ_LEN
    v_pad = m.shape[0] // SEQ_LEN

    # Batch tiling: tb rows per grid step, always a multiple of 16 (bf16-friendly,
    # satisfies the (8,128) block rule). Weights stay VMEM-resident (constant
    # index_map); batch slabs pipeline / shard across cores.
    b16 = _round_up(max(B, 1), 16)
    tb = min(_round_up(block_b, 16), b16)
    # v7x megacore: keep >= 2 grid steps whenever the batch allows it so both
    # TensorCores get work under dimension_semantics=("parallel",).
    if b16 >= 32:
        tb = min(tb, _round_up(b16 // 2, 16))
    b_padded = _round_up(B, tb)
    ids_p = jnp.pad(ids.astype(jnp.int32), ((0, b_padded - B), (0, 0)))

    out = pl.pallas_call(
        pos_kernel,
        out_shape=jax.ShapeDtypeStruct((b_padded, NUM_TAGS), jnp.float32),
        grid=(b_padded // tb,),
        in_specs=[
            pl.BlockSpec((tb, SEQ_LEN), lambda i: (i, 0)),                   # ids slab
            pl.BlockSpec((SEQ_LEN * v_pad, HIDDEN_PAD), lambda i: (0, 0)),   # fused M
            pl.BlockSpec((1, HIDDEN_PAD), lambda i: (0, 0)),                 # b1
            pl.BlockSpec((HIDDEN_PAD, OUT_PAD), lambda i: (0, 0)),           # W2
            pl.BlockSpec((1, OUT_PAD), lambda i: (0, 0)),                    # b2
        ],
        out_specs=pl.BlockSpec((tb, NUM_TAGS), lambda i: (i, 0)),
        compiler_params=pltpu.CompilerParams(
            dimension_semantics=("parallel",)),
    )(ids_p, m, b1p, w2p, b2p)

    return out if b_padded == B else out[:B]


def xavier_uniform(key, fan_in, fan_out):
    limit = jnp.sqrt(6.0 / (fan_in + fan_out))
    # stored as (in, out) so the math is x @ W (transpose of PyTorch layout)
    return jax.random.uniform(key, (fan_in, fan_out), jnp.float32, -limit, limit)


if __name__ == "__main__":
    key = jax.random.PRNGKey(0)
    k_emb, k_w1, k_b1, k_w2, k_b2, k_ids = jax.random.split(key, 6)

    VOCAB = 64
    B = 48

    # Embedding: N(0,1) like nn.Embedding default, padding row 0 zeroed.
    emb = jax.random.normal(k_emb, (VOCAB, EMB_DIM), jnp.float32)
    emb = emb.at[0].set(0.0)

    # fc1 (250 -> 100): xavier_uniform weight, bias ~ U(-1/sqrt(250), 1/sqrt(250))
    w1 = xavier_uniform(k_w1, SEQ_LEN * EMB_DIM, HIDDEN)
    b1 = jax.random.uniform(k_b1, (1, HIDDEN), jnp.float32,
                            -1.0 / jnp.sqrt(250.0), 1.0 / jnp.sqrt(250.0))

    # output_layer (100 -> 36)
    w2 = xavier_uniform(k_w2, HIDDEN, NUM_TAGS)
    b2 = jax.random.uniform(k_b2, (1, NUM_TAGS), jnp.float32,
                            -1.0 / jnp.sqrt(100.0), 1.0 / jnp.sqrt(100.0))

    # token ids, shape (B, 5); 0 is the padding id
    ids = jax.random.randint(k_ids, (B, SEQ_LEN), 0, VOCAB, jnp.int32)

    # Model-load-time fusion (done once, NOT per forward call).
    m, b1p, w2p, b2p = build_fused_params(emb, w1, b1, w2, b2)

    # block_b=16 so even this small batch exercises a multi-step parallel grid.
    out = pos_forward(ids, m, b1p, w2p, b2p, block_b=16)
    jax.block_until_ready(out)

    # sanity check against plain-JAX f32 reference (kernel uses bf16 MXU operands)
    ref = jnp.tanh(emb[ids].reshape(B, -1) @ w1 + b1) @ w2 + b2
    assert out.shape == (B, NUM_TAGS)
    err = jnp.max(jnp.abs(out - ref))
    assert jnp.allclose(out, ref, atol=5e-2, rtol=5e-2), f"mismatch vs reference, max|diff|={err:.3e}"

    print("KERNEL_OK")
</pallas_src>

<mosaic_0001>
module attributes {stable_mosaic.version = 11 : i64} {
  func.func @pos_kernel(%arg0: i32, %arg1: memref<16x5xi32, #tpu.memory_space<vmem>>, %arg2: memref<640x128xbf16, #tpu.memory_space<vmem>>, %arg3: memref<1x128xf32, #tpu.memory_space<vmem>>, %arg4: memref<128x128xbf16, #tpu.memory_space<vmem>>, %arg5: memref<1x128xf32, #tpu.memory_space<vmem>>, %arg6: memref<16x36xf32, #tpu.memory_space<vmem>>) attributes {dimension_semantics = [#tpu.dimension_semantics<parallel>], iteration_bounds = array<i64: 3>, scalar_prefetch = 0 : i64, scratch_operands = 0 : i64, tpu.core_type = #tpu.core_type<tc>, window_params = [{transform_indices = @transform_0, window_bounds = array<i64: 16, 5>}, {pipeline_mode = #tpu.pipeline_mode<synchronous>, transform_indices = @transform_1, window_bounds = array<i64: 640, 128>}, {pipeline_mode = #tpu.pipeline_mode<synchronous>, transform_indices = @transform_2, window_bounds = array<i64: 1, 128>}, {pipeline_mode = #tpu.pipeline_mode<synchronous>, transform_indices = @transform_3, window_bounds = array<i64: 128, 128>}, {pipeline_mode = #tpu.pipeline_mode<synchronous>, transform_indices = @transform_4, window_bounds = array<i64: 1, 128>}, {transform_indices = @transform_5, window_bounds = array<i64: 16, 36>}]} {
    %c0 = arith.constant 0 : index
    %c0_0 = arith.constant 0 : index
    %0 = vector.load %arg1[%c0, %c0_0] : memref<16x5xi32, #tpu.memory_space<vmem>>, vector<16x5xi32>
    %1 = tpu.iota {dimensions = array<i32: 1>} : vector<16x128xi32>
    %2 = vector.extract_strided_slice %0 {offsets = [0, 0], sizes = [16, 1], strides = [1, 1]} : vector<16x5xi32> to vector<16x1xi32>
    %3 = vector.broadcast %2 : vector<16x1xi32> to vector<16x128xi32>
    %4 = arith.cmpi eq, %1, %3 : vector<16x128xi32>
    %5 = arith.extui %4 : vector<16x128xi1> to vector<16x128xi32>
    %6 = arith.sitofp %5 : vector<16x128xi32> to vector<16x128xf32>
    %7 = arith.truncf %6 : vector<16x128xf32> to vector<16x128xbf16>
    %8 = vector.extract_strided_slice %0 {offsets = [0, 1], sizes = [16, 1], strides = [1, 1]} : vector<16x5xi32> to vector<16x1xi32>
    %9 = vector.broadcast %8 : vector<16x1xi32> to vector<16x128xi32>
    %10 = arith.cmpi eq, %1, %9 : vector<16x128xi32>
    %11 = arith.extui %10 : vector<16x128xi1> to vector<16x128xi32>
    %12 = arith.sitofp %11 : vector<16x128xi32> to vector<16x128xf32>
    %13 = arith.truncf %12 : vector<16x128xf32> to vector<16x128xbf16>
    %14 = vector.extract_strided_slice %0 {offsets = [0, 2], sizes = [16, 1], strides = [1, 1]} : vector<16x5xi32> to vector<16x1xi32>
    %15 = vector.broadcast %14 : vector<16x1xi32> to vector<16x128xi32>
    %16 = arith.cmpi eq, %1, %15 : vector<16x128xi32>
    %17 = arith.extui %16 : vector<16x128xi1> to vector<16x128xi32>
    %18 = arith.sitofp %17 : vector<16x128xi32> to vector<16x128xf32>
    %19 = arith.truncf %18 : vector<16x128xf32> to vector<16x128xbf16>
    %20 = vector.extract_strided_slice %0 {offsets = [0, 3], sizes = [16, 1], strides = [1, 1]} : vector<16x5xi32> to vector<16x1xi32>
    %21 = vector.broadcast %20 : vector<16x1xi32> to vector<16x128xi32>
    %22 = arith.cmpi eq, %1, %21 : vector<16x128xi32>
    %23 = arith.extui %22 : vector<16x128xi1> to vector<16x128xi32>
    %24 = arith.sitofp %23 : vector<16x128xi32> to vector<16x128xf32>
    %25 = arith.truncf %24 : vector<16x128xf32> to vector<16x128xbf16>
    %26 = vector.extract_strided_slice %0 {offsets = [0, 4], sizes = [16, 1], strides = [1, 1]} : vector<16x5xi32> to vector<16x1xi32>
    %27 = vector.broadcast %26 : vector<16x1xi32> to vector<16x128xi32>
    %28 = arith.cmpi eq, %1, %27 : vector<16x128xi32>
    %29 = arith.extui %28 : vector<16x128xi1> to vector<16x128xi32>
    %30 = arith.sitofp %29 : vector<16x128xi32> to vector<16x128xf32>
    %31 = arith.truncf %30 : vector<16x128xf32> to vector<16x128xbf16>
    %32 = tpu.concatenate %7, %13, %19, %25, %31 in 1 : vector<16x128xbf16>, vector<16x128xbf16>, vector<16x128xbf16>, vector<16x128xbf16>, vector<16x128xbf16> -> vector<16x640xbf16>
    %c0_1 = arith.constant 0 : index
    %c0_2 = arith.constant 0 : index
    %33 = vector.load %arg2[%c0_1, %c0_2] : memref<640x128xbf16, #tpu.memory_space<vmem>>, vector<640x128xbf16>
    %cst = arith.constant dense<0.000000e+00> : vector<16x128xf32>
    %34 = tpu.matmul %32, %33, %cst {dimension_numbers = #tpu.dot_dimension_numbers<[1], [0], [0], [1], [0, 0, 1, 1], [], []>} : vector<16x640xbf16>, vector<640x128xbf16>, vector<16x128xf32> -> vector<16x128xf32>
    %c0_3 = arith.constant 0 : index
    %c0_4 = arith.constant 0 : index
    %35 = vector.load %arg3[%c0_3, %c0_4] : memref<1x128xf32, #tpu.memory_space<vmem>>, vector<1x128xf32>
    %36 = vector.broadcast %35 : vector<1x128xf32> to vector<16x128xf32>
    %37 = arith.addf %34, %36 : vector<16x128xf32>
    %38 = math.tanh %37 : vector<16x128xf32>
    %39 = arith.truncf %38 : vector<16x128xf32> to vector<16x128xbf16>
    %c0_5 = arith.constant 0 : index
    %c0_6 = arith.constant 0 : index
    %40 = vector.load %arg4[%c0_5, %c0_6] : memref<128x128xbf16, #tpu.memory_space<vmem>>, vector<128x128xbf16>
    %cst_7 = arith.constant dense<0.000000e+00> : vector<16x128xf32>
    %41 = tpu.matmul %39, %40, %cst_7 {dimension_numbers = #tpu.dot_dimension_numbers<[1], [0], [0], [1], [0, 0, 1, 1], [], []>} : vector<16x128xbf16>, vector<128x128xbf16>, vector<16x128xf32> -> vector<16x128xf32>
    %c0_8 = arith.constant 0 : index
    %c0_9 = arith.constant 0 : index
    %42 = vector.load %arg5[%c0_8, %c0_9] : memref<1x128xf32, #tpu.memory_space<vmem>>, vector<1x128xf32>
    %43 = vector.broadcast %42 : vector<1x128xf32> to vector<16x128xf32>
    %44 = arith.addf %41, %43 : vector<16x128xf32>
    %45 = vector.extract_strided_slice %44 {offsets = [0, 0], sizes = [16, 36], strides = [1, 1]} : vector<16x128xf32> to vector<16x36xf32>
    %c0_10 = arith.constant 0 : index
    %c0_11 = arith.constant 0 : index
    %46 = vector.load %arg6[%c0_10, %c0_11] : memref<16x36xf32, #tpu.memory_space<vmem>>, vector<16x36xf32>
    tpu.vector_store %arg6[%c0_10, %c0_11], %45 {strides = array<i32>} : memref<16x36xf32, #tpu.memory_space<vmem>>, vector<16x36xf32>,
    return
  }
  func.func @transform_0(%arg0: i32) -> (i32, i32) {
    %c0_i32 = arith.constant 0 : i32
    %c0_i32_0 = arith.constant 0 : i32
    return %arg0, %c0_i32 : i32, i32
  }
  func.func @transform_1(%arg0: i32) -> (i32, i32) {
    %c0_i32 = arith.constant 0 : i32
    %c0_i32_0 = arith.constant 0 : i32
    %c0_i32_1 = arith.constant 0 : i32
    return %c0_i32, %c0_i32_0 : i32, i32
  }
  func.func @transform_2(%arg0: i32) -> (i32, i32) {
    %c0_i32 = arith.constant 0 : i32
    %c0_i32_0 = arith.constant 0 : i32
    %c0_i32_1 = arith.constant 0 : i32
    return %c0_i32, %c0_i32_0 : i32, i32
  }
  func.func @transform_3(%arg0: i32) -> (i32, i32) {
    %c0_i32 = arith.constant 0 : i32
    %c0_i32_0 = arith.constant 0 : i32
    %c0_i32_1 = arith.constant 0 : i32
    return %c0_i32, %c0_i32_0 : i32, i32
  }
  func.func @transform_4(%arg0: i32) -> (i32, i32) {
    %c0_i32 = arith.constant 0 : i32
    %c0_i32_0 = arith.constant 0 : i32
    %c0_i32_1 = arith.constant 0 : i32
    return %c0_i32, %c0_i32_0 : i32, i32
  }
  func.func @transform_5(%arg0: i32) -> (i32, i32) {
    %c0_i32 = arith.constant 0 : i32
    %c0_i32_0 = arith.constant 0 : i32
    return %arg0, %c0_i32 : i32, i32
  }
}

</mosaic_0001>

<bundles_post_ra>
// kernel: pos_forward.1
= control target key start
LH: loop header
LB: loop body
LE: loop exit
PB: predicated region body
PF: predicated region fallthrough
CT: control target
= control target key end

     0   :  { %10 = vsyncpa [#allocation3], 0  ;;  %s1304_s18 = smov 0   ;;  %s1420_s0 = inlined_call_operand.vmem [shape: s32[48,5], index: 0, kind: input, shape index: {}]   ;;  %s1421_s1 = inlined_call_operand.hbm [shape: bf16[640,128], index: 1, kind: input, shape index: {}]   ;;  %s1422_s2 = inlined_call_operand.vmem [shape: f32[1,128], index: 2, kind: input, shape index: {}]   ;;  %s1423_s3 = inlined_call_operand.vmem [shape: bf16[128,128], index: 3, kind: input, shape index: {}]   ;;  %s1424_s4 = inlined_call_operand.vmem [shape: f32[1,128], index: 4, kind: input, shape index: {}]   ;;  %s1425_s5 = inlined_call_operand.vmem [shape: f32[48,36], index: 5, kind: output, shape index: {}]  }
   0x1 LB: > { %s949_s19 = sadd.s32 4294967295, %s1261_s18   ;;  %p951_p0 = scmp.ge.s32.totalorder %s1261_s18, 1  ;;  %s1261_s18 = sphi %s1304_s18, %s16_s18  }
   0x2   : > { %p157_p1 = scmp.lt.s32.totalorder %s1261_s18, 4  ;;  %s1263_s20 = smov [#allocation2]  }
   0x3   : > { %s169_s21 = sshll.u32 %s1263_s20, 4  ;;  %p1318_p3 = scmp.eq.s32.totalorder %s949_s19, 0  ;;  %s170_s21 = int_to_ptr.vmem [resolvable:$true] %s169_s21 }
   0x4   : > { %p1312_p2 = pnand %p951_p0, %p157_p1  ;;  %s1223_s27 = scalar_lea.hbm %s1421_s1, 5120 }
   0x5   : > { %s1430_s23 = scalar_select %p1318_p3, 1, 0 }
   0x6   : > { %s1429_s22 = scalar_select %p1312_p2, 1, 0 }
   0x7   : > { %p1138_p4 = pneg %p1312_p2  ;;  %p1224_p6 = scmp.ne.s32.totalorder %s1421_s1, %s1223_s27 }
   0x8   : > { %p1230_p10 = scmp.lt.u32.totalorder %s1223_s27, %s1421_s1 }
   0x9   : > { %p1326_p5 = pnand %p1318_p3, %p1138_p4 }
   0xb   : > { %p1225_p7 = pneg %p1326_p5 }
   0xd   : > { %p1226_p8 = pnand %p1225_p7, %p1224_p6 }
   0xf   : > { %p1227_p9 = pneg %p1226_p8 }
  0x11   : > { %p1232_p11 = pnand %p1230_p10, %p1227_p9 }
  0x13   : > { %1235 = shalt.err (!%p1232_p11)
}
  0x14   : > { %s1236_s7 = scalar_lea.vmem %s170_s21, 5120  ;;  %p1244_p1 = scmp.lt.s32.totalorder %s170_s21, %s170_s21 }
  0x15   : > { %p1237_p12 = scmp.ne.s32.totalorder %s170_s21, %s1236_s7  ;;  %p1245_p4 = scmp.lt.s32.totalorder %s1236_s7, %s1236_s7 }
  0x17   : > { %p1239_p13 = pnand %p1237_p12, %p1225_p7  ;;  %p1246_p3 = por %p1245_p4, %p1244_p1 }
  0x19   : > { %p1240_p0 = pneg %p1239_p13 }
  0x1b   : > { %p1247_p2 = pnand %p1246_p3, %p1240_p0 }
  0x1d   : > { %1250 = shalt.err (!%p1247_p2)
}
  0x1e   : > { %s1264_s8 = smov 64   ;;  %s1265_s9 = smov 4  }
  0x1f   : > { %1141 = dma.hbm_to_vmem [thread:$0]  (!%p1326_p5), %s1421_s1, 5120, %s170_s21, [#allocation3], %s1264_s8, %s1264_s8, %s1265_s9  }
  0x20   : > { %p1432_p6 = scmp.ne.s32.totalorder %s1429_s22, 0 }
  0x21   : > { %p1433_p8 = scmp.ne.s32.totalorder (!%p1432_p6), %s1430_s23, 0 }
  0x22   : > { %203 = sbr.rel (%p1432_p6) target bundleno = 663 (0x297), region = 40 }
  0x29   : > { %1256 = dma.done.wait (%p1433_p8), [#allocation3], 5120  }
  0x2a   : > { %1258 = vsyncadd (%p1433_p8), [#allocation3], 4294962176  ;;  %s956_s12 = sshll.u32 %s949_s19, 1  ;;  %v1266_v0 = vmov 1   ;;  %v1267_v1 = vmov 0   ;;  %v1171_v4 = vld [vmem:[#allocation2 + $0x40] sm:$0xff]   ;;  %v246_v40 = vlaneseq }
  0x2b   : > { %1163 = vset.pattern.permute.xlu0 %v1266_v0  ;;  %1164 = vset.pattern.permute.xlu1 %v1267_v1  ;;  %p232_p2 = scmp.lt.s32.totalorder %s956_s12, 5  ;;  %v1172_v5 = vld [vmem:[#allocation2] sm:$0xff]   ;;  %v1173_v6 = vld [vmem:[#allocation2 + $0x48] sm:$0xff]   ;;  %v1175_v8 = vld [vmem:[#allocation2 + $0x50] sm:$0xff]   ;;  %v1268_v12 = vmov 3   ;;  %v1269_v18 = vmov 2  }
  0x2c   : > { %1032 = vmatprep.subr.bf16.mxu0 %v1171_v4  ;;  %v1174_v7 = vld [vmem:[#allocation2 + $0x8] sm:$0xff]   ;;  %v1176_v9 = vld [vmem:[#allocation2 + $0x10] sm:$0xff]   ;;  %v1177_v10 = vld [vmem:[#allocation2 + $0xc0] sm:$0xff]   ;;  %v1270_v24 = vmov 4   ;;  %v1271_v36 = vmov 0.0   ;;  %v247_v43 = vand.u32 127, %v246_v40 }
  0x2d   : > { %s1435_s12 = smov (!%p232_p2, %s956_s12), 5  ;;  %1033 = vmatpush3.bf16.msra.mxu0 %v1172_v5  ;;  %v1178_v11 = vld [vmem:[#allocation2 + $0x80] sm:$0xff]   ;;  %v1179_v13 = vld [vmem:[#allocation2 + $0x58] sm:$0xff]   ;;  %1054 = vmatprep.subr.bf16.mxu1 %v1177_v10  ;;  %v1181_v15 = vld [vmem:[#allocation2 + $0xc8] sm:$0xff]   ;;  %v1272_v47 = vmov 1.0|1.0  }
  0x2e   : > { %s957_s13 = sshll.u32 %s1435_s12, 3  ;;  %1034 = vmatprep.subr.bf16.mxu0 %v1173_v6  ;;  %v1180_v14 = vld [vmem:[#allocation2 + $0x18] sm:$0xff]   ;;  %1055 = vmatpush3.bf16.msra.mxu1 %v1178_v11  ;;  %v1182_v16 = vld [vmem:[#allocation2 + $0x88] sm:$0xff]   ;;  %v1183_v17 = vld [vmem:[#allocation2 + $0x60] sm:$0xff]   ;;  %vm1273_vm8 = vmmov 0  }
  0x2f   : > { %s235_s16 = scalar_lea.vmem %s1420_s0, %s957_s13  ;;  %1056 = vmatprep.subr.bf16.mxu1 %v1181_v15  ;;  %v1184_v19 = vld [vmem:[#allocation2 + $0x20] sm:$0xff]   ;;  %v1185_v20 = vld [vmem:[#allocation2 + $0xd0] sm:$0xff]   ;;  %v1187_v22 = vld [vmem:[#allocation2 + $0x68] sm:$0xff]   ;;  %s241_s17 = scalar_lea.vmem %s1425_s5, %s957_s13 }
  0x30   : > { %v244_v2 = vld [vmem:[%s235_s16] sm:$0xff]  ;;  %v245_v3 = vld [vmem:[%s235_s16 + $0x8] sm:$0xff]  ;;  %v1186_v21 = vld [vmem:[#allocation2 + $0x90] sm:$0xff]  }
  0x31   : > { %249 = vperm.xlu1 %1164, %v244_v2   ;;  %262 = vperm.xlu0 %1163, %v244_v2   ;;  %v1188_v23 = vld [vmem:[#allocation2 + $0x28] sm:$0xff]   ;;  %v1189_v25 = vld [vmem:[#allocation2 + $0xd8] sm:$0xff]   ;;  %v1191_v27 = vld [vmem:[#allocation2 + $0x70] sm:$0xff]  }
  0x32   : > { %1035 = vmatpush3.bf16.msra.mxu0 %v1174_v7  ;;  %1057 = vmatpush3.bf16.msra.mxu1 %v1182_v16  ;;  %v1190_v26 = vld [vmem:[#allocation2 + $0x98] sm:$0xff]   ;;  %v1192_v28 = vld [vmem:[#allocation2 + $0x30] sm:$0xff]   ;;  %v1193_v29 = vld [vmem:[#allocation2 + $0xe0] sm:$0xff]  }
  0x33   : > { %1036 = vmatprep.subr.bf16.mxu0 %v1175_v8  ;;  %1058 = vmatprep.subr.bf16.mxu1 %v1185_v20  ;;  %v1194_v30 = vld [vmem:[#allocation2 + $0xa0] sm:$0xff]   ;;  %v1195_v31 = vld [vmem:[#allocation2 + $0x78] sm:$0xff]   ;;  %v1197_v32 = vld [vmem:[#allocation2 + $0xe8] sm:$0xff]  }
  0x34   : > { %v1196_v33 = vld [vmem:[#allocation2 + $0x38] sm:$0xff]   ;;  %v1198_v34 = vld [vmem:[#allocation2 + $0xa8] sm:$0xff]   ;;  %v1200_v35 = vld [vmem:[#allocation2 + $0xf0] sm:$0xff]  }
  0x35   : > { %252 = vperm.xlu1 %1164, %v245_v3   ;;  %265 = vperm.xlu0 %1163, %v245_v3   ;;  %v1201_v37 = vld [vmem:[#allocation2 + $0xb0] sm:$0xff]   ;;  %v1203_v38 = vld [vmem:[#allocation2 + $0xf8] sm:$0xff]   ;;  %v1199_v46 = vld [vmem:[#allocation2 + $0x100] sm:$0xff]  }
  0x36   : > { %1037 = vmatpush3.bf16.msra.mxu0 %v1176_v9  ;;  %1059 = vmatpush3.bf16.msra.mxu1 %v1186_v21  ;;  %v1204_v39 = vld [vmem:[#allocation2 + $0xb8] sm:$0xff]   ;;  %v1202_v50 = vld [vmem:[#allocation2 + $0x108] sm:$0xff]   ;;  %v1205_v53 = vld [vmem:[#allocation2 + $0x110] sm:$0xff]  }
  0x37   : > { %1038 = vmatprep.subr.bf16.mxu0 %v1179_v13  ;;  %1060 = vmatprep.subr.bf16.mxu1 %v1189_v25  ;;  %v1206_v54 = vld [vmem:[#allocation2 + $0x118] sm:$0xff]   ;;  %v1207_v55 = vld [vmem:[#allocation2 + $0x120] sm:$0xff]   ;;  %v1208_v56 = vld [vmem:[#allocation2 + $0x128] sm:$0xff]  }
  0x38   : > { %v1209_v58 = vld [vmem:[#allocation2 + $0x130] sm:$0xff]   ;;  %v1210_v60 = vld [vmem:[#allocation2 + $0x138] sm:$0xff]   ;;  %v1211_v61 = vld [vmem:[%s1423_s3] sm:$0xff]  }
  0x39   : > { %1166 = vset.pattern.permute.xlu1 %v1268_v12  ;;  %1165 = vset.pattern.permute.xlu0 %v1268_v12  ;;  %v1212_v62 = vld [vmem:[%s1423_s3 + $0x8] sm:$0xff]   ;;  %v1213_v63 = vld [vmem:[%s1423_s3 + $0x10] sm:$0xff]   ;;  %v1214_v0 = vld [vmem:[%s1423_s3 + $0x18] sm:$0xff]  }
  0x3a   : > { %291 = vperm.xlu1 %1166, %v245_v3   ;;  %288 = vperm.xlu0 %1165, %v244_v2   ;;  %v1215_v1 = vld [vmem:[%s1423_s3 + $0x20] sm:$0xff]   ;;  %v1218_v4 = vld [vmem:[%s1423_s3 + $0x38] sm:$0xff]  }
  0x3b   : > { %1039 = vmatpush3.bf16.msra.mxu0 %v1180_v14  ;;  %1061 = vmatpush3.bf16.msra.mxu1 %v1190_v26  ;;  %v970_v11 = vld [vmem:[%s1422_s2] ss:$0 sm:$0xff] }
  0x3c   : > { %1040 = vmatprep.subr.bf16.mxu0 %v1183_v17  ;;  %1062 = vmatprep.subr.bf16.mxu1 %v1193_v29 }
  0x3e   : > { %1167 = vset.pattern.permute.xlu1 %v1269_v18  ;;  %1168 = vset.pattern.permute.xlu0 %v1269_v18 }
  0x3f   : > { %275 = vperm.xlu1 %1167, %v244_v2   ;;  %278 = vperm.xlu0 %1168, %v245_v3  }
  0x40   : > { %1041 = vmatpush3.bf16.msra.mxu0 %v1184_v19  ;;  %1063 = vmatpush3.bf16.msra.mxu1 %v1194_v30 }
  0x41   : > { %1042 = vmatprep.subr.bf16.mxu0 %v1187_v22  ;;  %1064 = vmatprep.subr.bf16.mxu1 %v1197_v32 }
  0x43   : > { %1169 = vset.pattern.permute.xlu1 %v1270_v24  ;;  %1170 = vset.pattern.permute.xlu0 %v1270_v24 }
  0x44   : > { %301 = vperm.xlu1 %1169, %v244_v2   ;;  %1043 = vmatpush3.bf16.msra.mxu0 %v1188_v23  ;;  %v1216_v2 = vld [vmem:[%s1423_s3 + $0x28] sm:$0xff]  }
  0x45   : > { %1044 = vmatprep.subr.bf16.mxu0 %v1191_v27  ;;  %1065 = vmatpush3.bf16.msra.mxu1 %v1198_v34 }
  0x46   : > { %1066 = vmatprep.subr.bf16.mxu1 %v1200_v35 }
  0x48   : > { %304 = vperm.xlu1 %1169, %v245_v3   ;;  %1045 = vmatpush3.bf16.msra.mxu0 %v1192_v28  ;;  %v1217_v3 = vld [vmem:[%s1423_s3 + $0x30] sm:$0xff]  }
  0x49   : > { %1046 = vmatprep.subr.bf16.mxu0 %v1195_v31  ;;  %1067 = vmatpush3.bf16.msra.mxu1 %v1201_v37  ;;  %v1021_v31 = vld [vmem:[%s1424_s4] ss:$0 sm:$0xff] }
  0x4a   : > { %1068 = vmatprep.subr.bf16.mxu1 %v1203_v38 }
  0x4c   : > { %1047 = vmatpush3.bf16.msra.mxu0 %v1196_v33 }
  0x4d   : > { %1094 = vmatprep.subr.bf16.mxu0 %v1271_v36  ;;  %1069 = vmatpush3.bf16.msra.mxu1 %v1204_v39 }
  0x4e   : > { %1114 = vmatprep.subr.bf16.mxu1 %v1271_v36 }
  0xb0   : > { %v250_v41 = vpop.permute.xlu1 %249  ;;  %v263_v42 = vpop.permute.xlu0 %262 }
  0xb1   : > { %vm254_vm0 = vcmp.eq.s32.totalorder %v247_v43, %v250_v41  ;;  %vm267_vm3 = vcmp.eq.s32.totalorder %v247_v43, %v263_v42 }
  0xb4   : > { %v253_v44 = vpop.permute.xlu1 %252  ;;  %v266_v45 = vpop.permute.xlu0 %265 }
  0xb5   : > { %vm255_vm1 = vcmp.eq.s32.totalorder %v247_v43, %v253_v44  ;;  %vm268_vm2 = vcmp.eq.s32.totalorder %v247_v43, %v266_v45 }
  0xb6   : > { %vm1013_vm4 = vmpackc.low %vm255_vm1, %vm254_vm0  ;;  %vm878_vm0 = vcmask 293888  }
  0xb7   : > { %vm1011_vm5 = vmpackc.low %vm268_vm2, %vm267_vm3 }
  0xb8   : > { %1012 = vmatprep.mubr.msk.bf16.mxu0 %vm1011_vm5, %v1272_v47 }
  0xb9   : > { %1014 = vmatmul.mubr.msk.bf16.vlgmr.msra.gmra.mrb[0].mxu0 %vm1013_vm4, %v1272_v47  ;;  %v292_v48 = vpop.permute.xlu1 %291  ;;  %v289_v49 = vpop.permute.xlu0 %288 }
  0xba   : > { %1095 = vmatpush3.bf16.msra.mxu0 %v1199_v46  ;;  %vm294_vm6 = vcmp.eq.s32.totalorder %v247_v43, %v292_v48  ;;  %vm293_vm7 = vcmp.eq.s32.totalorder %v247_v43, %v289_v49  ;;  %1110 = vmatprep.mubr.msk.bf16.mxu0 %vm1273_vm8, %v1271_v36 }
  0xbb   : > { %1096 = vmatprep.subr.bf16.mxu0 %v1271_v36  ;;  %vm1015_vm9 = vmpackc.low %vm294_vm6, %vm293_vm7 }
  0xbc   : > { %1016 = vmatprep.mubr.msk.bf16.mxu1 %vm1015_vm9, %v1272_v47 }
  0xbe   : > { %1097 = vmatpush3.bf16.msra.mxu0 %v1202_v50  ;;  %v276_v51 = vpop.permute.xlu1 %275  ;;  %v279_v52 = vpop.permute.xlu0 %278 }
  0xbf   : > { %vm280_vm10 = vcmp.eq.s32.totalorder %v247_v43, %v276_v51  ;;  %vm281_vm11 = vcmp.eq.s32.totalorder %v247_v43, %v279_v52  ;;  %1098 = vmatprep.subr.bf16.mxu0 %v1271_v36 }
  0xc0   : > { %vm1017_vm12 = vmpackc.low %vm281_vm11, %vm280_vm10 }
  0xc1   : > { %1018 = vmatmul.mubr.msk.bf16.vlgmr.msra.gmra.mrb[0].mxu1 %vm1017_vm12, %v1272_v47 }
  0xc2   : > { %1099 = vmatpush3.bf16.msra.mxu0 %v1205_v53  ;;  %1130 = vmatprep.mubr.msk.bf16.mxu1 %vm1273_vm8, %v1271_v36 }
  0xc3   : > { %1100 = vmatprep.subr.bf16.mxu0 %v1271_v36  ;;  %v302_v57 = vpop.permute.xlu1 %301  ;;  %1115 = vmatpush3.bf16.msra.mxu1 %v1211_v61 }
  0xc4   : > { %vm306_vm13 = vcmp.eq.s32.totalorder %v247_v43, %v302_v57  ;;  %1116 = vmatprep.subr.bf16.mxu1 %v1271_v36 }
  0xc6   : > { %1101 = vmatpush3.bf16.msra.mxu0 %v1206_v54 }
  0xc7   : > { %1102 = vmatprep.subr.bf16.mxu0 %v1271_v36  ;;  %v305_v59 = vpop.permute.xlu1 %304  ;;  %1117 = vmatpush3.bf16.msra.mxu1 %v1212_v62 }
  0xc8   : > { %vm307_vm14 = vcmp.eq.s32.totalorder %v247_v43, %v305_v59  ;;  %1118 = vmatprep.subr.bf16.mxu1 %v1271_v36 }
  0xc9   : > { %vm1019_vm15 = vmpackc.low %vm307_vm14, %vm306_vm13 }
  0xca   : > { %1103 = vmatpush3.bf16.msra.mxu0 %v1207_v55 }
  0xcb   : > { %1104 = vmatprep.subr.bf16.mxu0 %v1271_v36  ;;  %1119 = vmatpush3.bf16.msra.mxu1 %v1213_v63 }
  0xcc   : > { %1120 = vmatprep.subr.bf16.mxu1 %v1271_v36 }
  0xce   : > { %1105 = vmatpush3.bf16.msra.mxu0 %v1208_v56 }
  0xcf   : > { %1106 = vmatprep.subr.bf16.mxu0 %v1271_v36  ;;  %1121 = vmatpush3.bf16.msra.mxu1 %v1214_v0 }
  0xd0   : > { %1122 = vmatprep.subr.bf16.mxu1 %v1271_v36 }
  0xd2   : > { %1107 = vmatpush3.bf16.msra.mxu0 %v1209_v58 }
  0xd3   : > { %1108 = vmatprep.subr.bf16.mxu0 %v1271_v36  ;;  %1123 = vmatpush3.bf16.msra.mxu1 %v1215_v1 }
  0xd4   : > { %1124 = vmatprep.subr.bf16.mxu1 %v1271_v36 }
  0xd6   : > { %1109 = vmatpush3.bf16.msra.mxu0 %v1210_v60 }
  0xd7   : > { %1125 = vmatpush3.bf16.msra.mxu1 %v1216_v2 }
  0xd8   : > { %1126 = vmatprep.subr.bf16.mxu1 %v1271_v36 }
  0xd9   : > { %1111 = vmatmul.mubr.msk.bf16.vlgmr.msra.gmra.mrb[4].mxu0 %vm1019_vm15, %v1272_v47 }
  0xdb   : > { %1127 = vmatpush3.bf16.msra.mxu1 %v1217_v3 }
  0xdc   : > { %1128 = vmatprep.subr.bf16.mxu1 %v1271_v36 }
  0xdf   : > { %1129 = vmatpush3.bf16.msra.mxu1 %v1218_v4 }
 0x18c   : > { %v1048_v5 = vpop.f32.mrb[0].mxu0 }
 0x18d   : > { %v1049_v6 = vpop.f32.mrb[1].mxu0 }
 0x18e   : > { %v1050_v7 = vadd.f32 %v1049_v6, %v1048_v5  ;;  %v1051_v8 = vpop.f32.mrb[2].mxu0 }
 0x18f   : > { %v1052_v9 = vpop.f32.mrb[3].mxu0 }
 0x190   : > { %v1053_v10 = vadd.f32 %v1052_v9, %v1051_v8  ;;  %v675_v14 = vadd.f32 %v1050_v7, %v970_v11 }
 0x192   : > { %v678_v18 = vadd.f32 %v1053_v10, %v970_v11 }
 0x194   : > { %v1070_v12 = vpop.f32.mrb[0].mxu1 }
 0x195   : > { %v1071_v13 = vpop.f32.mrb[1].mxu1 }
 0x196   : > { %v1072_v15 = vadd.f32 %v1071_v13, %v1070_v12  ;;  %v1073_v16 = vpop.f32.mrb[2].mxu1 }
 0x197   : > { %v1074_v17 = vpop.f32.mrb[3].mxu1 }
 0x198   : > { %v1075_v19 = vadd.f32 %v1074_v17, %v1073_v16  ;;  %v716_v20 = vadd.f32 %v1072_v15, %v675_v14 }
 0x19a   : > { %v719_v21 = vadd.f32 %v1075_v19, %v678_v18 }
 0x1ac   : > { %v756_v22 = vpop.f32.mrb[4].mxu0 }
 0x1ad   : > { %v757_v23 = vadd.f32 %v756_v22, %v716_v20  ;;  %v1112_v24 = vpop.f32.mrb[5].mxu0 }
 0x1ae   : > { %v759_v25 = vpop.f32.mrb[6].mxu0 }
 0x1af   : > { %v760_v26 = vadd.f32 %v759_v25, %v719_v21  ;;  %v1113_v27 = vpop.f32.mrb[7].mxu0  ;;  %1219 = vtanh.f32 %v757_v23 }
 0x1b1   : > { %1221 = vtanh.f32 %v760_v26 }
 0x1b9   : > { %v1220_v28 = vpop.eup %1219 }
 0x1bb   : > { %v1222_v29 = vpop.eup %1221 }
 0x1bc   : > { %v765_v30 = vpack.c.bf16 %v1222_v29, %v1220_v28 }
 0x1be   : > { %1131 = vmatmul.mubr.bf16.vlgmr.msra.gmra.mrb[4].mxu1 %v765_v30 }
 0x291   : > { %v871_v32 = vpop.f32.mrb[4].mxu1 }
 0x292   : > { %v872_v33 = vadd.f32 %v1021_v31, %v871_v32  ;;  %v1132_v34 = vpop.f32.mrb[5].mxu1 }
 0x293   : > { %v874_v35 = vpop.f32.mrb[6].mxu1 }
 0x294   : > { %879 = vst.msk [vmem:[%s241_s17] sm:$0xff] %vm878_vm0, %v872_v33  ;;  %v875_v36 = vadd.f32 %v1021_v31, %v874_v35  ;;  %v1133_v37 = vpop.f32.mrb[7].mxu1 }
 0x296   : > { %880 = vst.msk [vmem:[%s241_s17 + $0x8] sm:$0xff] %vm878_vm0, %v875_v36 }
 0x297 PF: > { %s16_s18 = sadd.s32 1, %s1261_s18  }
 0x298   : > { %p13_p3 = scmp.ge.s32.totalorder %s16_s18, 5  }
 0x29a   :  { %15 = sbr.rel (!%p13_p3) target bundleno = 1 (0x1), region = 75 }
 0x2a1   :  { %903 = vsyncpa [#allocation3], 1 }
 0x2a2   :  { %905 = vsyncpa [#allocation3 + $0x1], 1 }

</bundles_post_ra>
